<compile_context>
chip_gen: v5e
topology: v5e:2x2
jax: 0.10.0
libtpu: 0.0.40
codegen_flags: <defaults>
</compile_context>

<pallas_src>
import functools
import math

import jax
import jax.numpy as jnp
from jax import lax
from jax.experimental import pallas as pl
from jax.experimental.pallas import tpu as pltpu


def _scores_kernel_qhk(q_ref, k_ref, m_ref, o_ref, *, inv_sqrt_d, relayout):
    """One (batch, query-tile, key-tile) grid step; all heads at once.

    q_ref: (1, nh, Tq, d)   per-head query tile
    k_ref: (1, nh, Tk, d)   per-head key tile
    m_ref: (1, Tq, 1)       attention mask column (added along the *query* dim)
    o_ref: (1, Tq, nh, Tk)  ReLU'd scores, already in the module's return layout
    """
    m = m_ref[0]                                        # (Tq, 1)
    if relayout == "einshape":
        q = q_ref[0] * inv_sqrt_d                       # (nh, Tq, d) -- scale on S*d, not S^2
        k = k_ref[0]                                    # (nh, Tk, d)
        # Batched-over-heads matmul contracting the last dims (no k.T).
        s = lax.dot_general(
            q, k,
            dimension_numbers=(((2,), (2,)), ((0,), (0,))),
            preferred_element_type=jnp.float32)         # (nh, Tq, Tk)
        p = jnp.maximum(s + m[None, :, :], 0.0)         # mask over query positions, ReLU
        # In-VMEM relayout so the store is directly in [B, Sq, nh, Sk] layout.
        o_ref[0] = pltpu.einshape("hqk->qhk", p)        # (Tq, nh, Tk)
    else:  # "per_head": small static loop, per-head strided stores into the nh dim
        nh = q_ref.shape[1]
        for h in range(nh):
            q_h = q_ref[0, h] * inv_sqrt_d              # (Tq, d)
            k_h = k_ref[0, h]                           # (Tk, d)
            s = lax.dot_general(
                q_h, k_h,
                dimension_numbers=(((1,), (1,)), ((), ())),
                preferred_element_type=jnp.float32)     # (Tq, Tk)
            o_ref[0, :, h, :] = jnp.maximum(s + m, 0.0)


def _scores_kernel_hqk(q_ref, k_ref, m_ref, o_ref, *, inv_sqrt_d):
    """Last-resort variant: natural (nh, Tq, Tk) output layout (wrapper transposes)."""
    q = q_ref[0] * inv_sqrt_d                           # (nh, Tq, d)
    k = k_ref[0]                                        # (nh, Tk, d)
    s = lax.dot_general(
        q, k,
        dimension_numbers=(((2,), (2,)), ((0,), (0,))),
        preferred_element_type=jnp.float32)             # (nh, Tq, Tk)
    o_ref[0] = jnp.maximum(s + m_ref[0][None, :, :], 0.0)


@functools.partial(jax.jit,
                   static_argnames=("num_heads", "mode", "tq_max", "tk_max"))
def sparse_attention(hidden_states, attention_mask, wq, bq, wk, bk, *,
                     num_heads, mode="direct_einshape", tq_max=256, tk_max=512):
    """hidden_states: [B, S, H] f32; attention_mask: [B, S] f32.
    wq, wk: [H, H] ([in, out] convention, i.e. PyTorch weight.T); bq, bk: [H].
    Returns context_layer = relu(scores).transpose(1, 2): [B, S, num_heads, S] f32."""
    B, S, H = hidden_states.shape
    assert H % num_heads == 0
    nh, d = num_heads, H // num_heads

    # Projections: one full-width [H,H] matmul each (optimal MXU width, computed
    # exactly once), then the cheap [B,S,H] -> [B,nh,S,d] head split/transpose.
    q = (hidden_states @ wq + bq).reshape(B, S, nh, d).transpose(0, 2, 1, 3)
    k = (hidden_states @ wk + bk).reshape(B, S, nh, d).transpose(0, 2, 1, 3)
    mask = attention_mask.reshape(B, S, 1).astype(jnp.float32)

    # Tile sizes: full axis at small S, otherwise caps sized so the double-buffered
    # blocks stay well under the v7x 64 MiB VMEM budget (Tk multiple of 128 for
    # lane-dense, unmasked stores at realistic S).
    Tq = S if S <= tq_max else tq_max
    Tk = S if S <= tk_max else tk_max
    # TODO(synk): pad / use ragged tiles when S is not divisible by the tile caps.
    if S % Tq:
        Tq = S
    if S % Tk:
        Tk = S
    grid = (B, S // Tq, S // Tk)

    in_specs = [
        pl.BlockSpec((1, nh, Tq, d), lambda b, qi, ki: (b, 0, qi, 0)),   # q tile (all heads)
        pl.BlockSpec((1, nh, Tk, d), lambda b, qi, ki: (b, 0, ki, 0)),   # k tile (all heads)
        pl.BlockSpec((1, Tq, 1),     lambda b, qi, ki: (b, qi, 0)),      # mask column
    ]
    cparams = pltpu.CompilerParams(
        dimension_semantics=("parallel", "parallel", "parallel"),
        vmem_limit_bytes=48 * 1024 * 1024)
    inv_sqrt_d = 1.0 / math.sqrt(d)

    if mode in ("direct_einshape", "direct_perhead"):
        relayout = "einshape" if mode == "direct_einshape" else "per_head"
        kernel = functools.partial(_scores_kernel_qhk,
                                   inv_sqrt_d=inv_sqrt_d, relayout=relayout)
        # Output written directly in [B, Sq, nh, Sk]; no wrapper transpose.
        return pl.pallas_call(
            kernel,
            out_shape=jax.ShapeDtypeStruct((B, S, nh, S), jnp.float32),
            grid_spec=pltpu.PrefetchScalarGridSpec(
                num_scalar_prefetch=0,
                grid=grid,
                in_specs=in_specs,
                out_specs=pl.BlockSpec((1, Tq, nh, Tk),
                                       lambda b, qi, ki: (b, qi, 0, ki))),
            compiler_params=cparams,
        )(q, k, mask)

    # Last-resort layout: natural [B, nh, S, S] + wrapper transpose (extra HBM pass).
    kernel = functools.partial(_scores_kernel_hqk, inv_sqrt_d=inv_sqrt_d)
    out = pl.pallas_call(
        kernel,
        out_shape=jax.ShapeDtypeStruct((B, nh, S, S), jnp.float32),
        grid_spec=pltpu.PrefetchScalarGridSpec(
            num_scalar_prefetch=0,
            grid=grid,
            in_specs=in_specs,
            out_specs=pl.BlockSpec((1, nh, Tq, Tk),
                                   lambda b, qi, ki: (b, 0, qi, ki))),
        compiler_params=cparams,
    )(q, k, mask)
    return jnp.transpose(out, (0, 2, 1, 3))


def _reference(hidden_states, attention_mask, wq, bq, wk, bk, num_heads):
    B, S, H = hidden_states.shape
    d = H // num_heads
    q = hidden_states @ wq + bq                               # [B, S, H]
    k = hidden_states @ wk + bk
    q = q.reshape(B, S, num_heads, d).transpose(0, 2, 1, 3)   # [B, nh, S, d]
    k = k.reshape(B, S, num_heads, d).transpose(0, 2, 1, 3)
    scores = jnp.einsum("bhqd,bhkd->bhqk", q, k) / math.sqrt(d)
    scores = scores + attention_mask[:, None, :, None]        # mask along query dim
    probs = jnp.maximum(scores, 0.0)
    return jnp.transpose(probs, (0, 2, 1, 3))                 # [B, S, nh, S]


if __name__ == "__main__":
    # config.hidden_size=32, num_sparse_heads=4 -> head_size=8; batch=2, seq=8
    B, S, H, NH = 2, 8, 32, 4
    key = jax.random.PRNGKey(0)
    k1, k2, k3, k4, k5, k6 = jax.random.split(key, 6)

    hidden_states = jax.random.normal(k1, (B, S, H), dtype=jnp.float32)
    attention_mask = jax.random.normal(k2, (B, S), dtype=jnp.float32) * 0.1

    # Deterministic parameter init (Linear weights stored as [in, out]).
    scale = 1.0 / math.sqrt(H)
    wq = jax.random.uniform(k3, (H, H), jnp.float32, -scale, scale)
    bq = jax.random.uniform(k4, (H,), jnp.float32, -scale, scale)
    wk = jax.random.uniform(k5, (H, H), jnp.float32, -scale, scale)
    bk = jax.random.uniform(k6, (H,), jnp.float32, -scale, scale)

    out, last_err = None, None
    for mode in ("direct_einshape", "direct_perhead", "natural_transpose"):
        try:
            out = jax.block_until_ready(
                sparse_attention(hidden_states, attention_mask, wq, bq, wk, bk,
                                 num_heads=NH, mode=mode))
            break
        except Exception as e:   # layout-lowering fallback; same math either way
            last_err = e
    if out is None:
        raise last_err

    ref = _reference(hidden_states, attention_mask, wq, bq, wk, bk, NH)
    assert out.shape == (B, S, NH, S), out.shape
    assert jnp.allclose(out, ref, atol=1e-5, rtol=1e-5), "mismatch vs reference"

    print("KERNEL_OK")
</pallas_src>

<mosaic_0001>
module attributes {stable_mosaic.version = 11 : i64} {
  func.func @_scores_kernel_qhk(%arg0: i32, %arg1: i32, %arg2: i32, %arg3: memref<1x4x8x8xf32, #tpu.memory_space<vmem>>, %arg4: memref<1x4x8x8xf32, #tpu.memory_space<vmem>>, %arg5: memref<1x8x1xf32, #tpu.memory_space<vmem>>, %arg6: memref<1x8x4x8xf32, #tpu.memory_space<vmem>>) attributes {dimension_semantics = [#tpu.dimension_semantics<parallel>, #tpu.dimension_semantics<parallel>, #tpu.dimension_semantics<parallel>], iteration_bounds = array<i64: 2, 1, 1>, scalar_prefetch = 0 : i64, scratch_operands = 0 : i64, tpu.core_type = #tpu.core_type<tc>, window_params = [{transform_indices = @transform_0, window_bounds = array<i64: 1, 4, 8, 8>}, {transform_indices = @transform_1, window_bounds = array<i64: 1, 4, 8, 8>}, {transform_indices = @transform_2, window_bounds = array<i64: 1, 8, 1>}, {transform_indices = @transform_3, window_bounds = array<i64: 1, 8, 4, 8>}]} {
    %c0 = arith.constant 0 : index
    %c0_0 = arith.constant 0 : index
    %c0_1 = arith.constant 0 : index
    %0 = vector.load %arg5[%c0, %c0_0, %c0_1] : memref<1x8x1xf32, #tpu.memory_space<vmem>>, vector<1x8x1xf32>
    %1 = vector.shape_cast %0 : vector<1x8x1xf32> to vector<8x1xf32>
    %c0_2 = arith.constant 0 : index
    %c0_3 = arith.constant 0 : index
    %c0_4 = arith.constant 0 : index
    %c0_5 = arith.constant 0 : index
    %2 = vector.load %arg3[%c0_2, %c0_3, %c0_4, %c0_5] : memref<1x4x8x8xf32, #tpu.memory_space<vmem>>, vector<1x4x8x8xf32>
    %3 = vector.shape_cast %2 : vector<1x4x8x8xf32> to vector<4x8x8xf32>
    %cst = arith.constant 0.353553385 : f32
    %4 = vector.broadcast %cst : f32 to vector<4x8x8xf32>
    %5 = arith.mulf %3, %4 : vector<4x8x8xf32>
    %c0_6 = arith.constant 0 : index
    %c0_7 = arith.constant 0 : index
    %c0_8 = arith.constant 0 : index
    %c0_9 = arith.constant 0 : index
    %6 = vector.load %arg4[%c0_6, %c0_7, %c0_8, %c0_9] : memref<1x4x8x8xf32, #tpu.memory_space<vmem>>, vector<1x4x8x8xf32>
    %7 = vector.shape_cast %6 : vector<1x4x8x8xf32> to vector<4x8x8xf32>
    %cst_10 = arith.constant dense<0.000000e+00> : vector<4x8x8xf32>
    %8 = tpu.matmul %5, %7, %cst_10 {dimension_numbers = #tpu.dot_dimension_numbers<[2], [2], [1], [1], [0, 0, 0, 1, 1, 1], [0], [0]>} : vector<4x8x8xf32>, vector<4x8x8xf32>, vector<4x8x8xf32> -> vector<4x8x8xf32>
    %9 = vector.shape_cast %1 : vector<8x1xf32> to vector<1x8x1xf32>
    %10 = vector.broadcast %9 : vector<1x8x1xf32> to vector<4x8x8xf32>
    %11 = arith.addf %8, %10 : vector<4x8x8xf32>
    %cst_11 = arith.constant 0.000000e+00 : f32
    %12 = vector.broadcast %cst_11 : f32 to vector<4x8x8xf32>
    %13 = arith.maximumf %11, %12 : vector<4x8x8xf32>
    %14 = tpu.transpose %13, [1, 0, 2] : vector<4x8x8xf32> -> vector<8x4x8xf32>
    %c0_12 = arith.constant 0 : index
    %c0_13 = arith.constant 0 : index
    %c0_14 = arith.constant 0 : index
    %c0_15 = arith.constant 0 : index
    %15 = vector.load %arg6[%c0_12, %c0_13, %c0_14, %c0_15] : memref<1x8x4x8xf32, #tpu.memory_space<vmem>>, vector<1x8x4x8xf32>
    %16 = vector.shape_cast %15 : vector<1x8x4x8xf32> to vector<8x4x8xf32>
    %17 = vector.shape_cast %14 : vector<8x4x8xf32> to vector<1x8x4x8xf32>
    tpu.vector_store %arg6[%c0_12, %c0_13, %c0_14, %c0_15], %17 {strides = array<i32>} : memref<1x8x4x8xf32, #tpu.memory_space<vmem>>, vector<1x8x4x8xf32>,
    return
  }
  func.func @transform_0(%arg0: i32, %arg1: i32, %arg2: i32) -> (i32, i32, i32, i32) {
    %c0_i32 = arith.constant 0 : i32
    %c0_i32_0 = arith.constant 0 : i32
    %c0_i32_1 = arith.constant 0 : i32
    return %arg0, %c0_i32, %arg1, %c0_i32_0 : i32, i32, i32, i32
  }
  func.func @transform_1(%arg0: i32, %arg1: i32, %arg2: i32) -> (i32, i32, i32, i32) {
    %c0_i32 = arith.constant 0 : i32
    %c0_i32_0 = arith.constant 0 : i32
    %c0_i32_1 = arith.constant 0 : i32
    return %arg0, %c0_i32, %arg2, %c0_i32_0 : i32, i32, i32, i32
  }
  func.func @transform_2(%arg0: i32, %arg1: i32, %arg2: i32) -> (i32, i32, i32) {
    %c0_i32 = arith.constant 0 : i32
    %c0_i32_0 = arith.constant 0 : i32
    return %arg0, %arg1, %c0_i32 : i32, i32, i32
  }
  func.func @transform_3(%arg0: i32, %arg1: i32, %arg2: i32) -> (i32, i32, i32, i32) {
    %c0_i32 = arith.constant 0 : i32
    %c0_i32_0 = arith.constant 0 : i32
    return %arg0, %arg1, %c0_i32, %arg2 : i32, i32, i32, i32
  }
}

module attributes {stable_mosaic.version = 11 : i64} {
  func.func @_scores_kernel_qhk(%arg0: i32, %arg1: i32, %arg2: i32, %arg3: memref<1x4x8x8xf32, #tpu.memory_space<vmem>>, %arg4: memref<1x4x8x8xf32, #tpu.memory_space<vmem>>, %arg5: memref<1x8x1xf32, #tpu.memory_space<vmem>>, %arg6: memref<1x8x4x8xf32, #tpu.memory_space<vmem>>) attributes {dimension_semantics = [#tpu.dimension_semantics<parallel>, #tpu.dimension_semantics<parallel>, #tpu.dimension_semantics<parallel>], iteration_bounds = array<i64: 2, 1, 1>, scalar_prefetch = 0 : i64, scratch_operands = 0 : i64, tpu.core_type = #tpu.core_type<tc>, window_params = [{transform_indices = @transform_0, window_bounds = array<i64: 1, 4, 8, 8>}, {transform_indices = @transform_1, window_bounds = array<i64: 1, 4, 8, 8>}, {transform_indices = @transform_2, window_bounds = array<i64: 1, 8, 1>}, {transform_indices = @transform_3, window_bounds = array<i64: 1, 8, 4, 8>}]} {
    %c0 = arith.constant 0 : index
    %c0_0 = arith.constant 0 : index
    %c0_1 = arith.constant 0 : index
    %0 = vector.load %arg5[%c0, %c0_0, %c0_1] : memref<1x8x1xf32, #tpu.memory_space<vmem>>, vector<1x8x1xf32>
    %1 = vector.shape_cast %0 : vector<1x8x1xf32> to vector<8x1xf32>
    %c0_2 = arith.constant 0 : index
    %c0_3 = arith.constant 0 : index
    %c0_4 = arith.constant 0 : index
    %c0_5 = arith.constant 0 : index
    %2 = vector.load %arg3[%c0_2, %c0_3, %c0_4, %c0_5] : memref<1x4x8x8xf32, #tpu.memory_space<vmem>>, vector<1x1x8x8xf32>
    %3 = vector.shape_cast %2 : vector<1x1x8x8xf32> to vector<8x8xf32>
    %cst = arith.constant 0.353553385 : f32
    %4 = vector.broadcast %cst : f32 to vector<8x8xf32>
    %5 = arith.mulf %3, %4 : vector<8x8xf32>
    %c0_6 = arith.constant 0 : index
    %c0_7 = arith.constant 0 : index
    %c0_8 = arith.constant 0 : index
    %c0_9 = arith.constant 0 : index
    %6 = vector.load %arg4[%c0_6, %c0_7, %c0_8, %c0_9] : memref<1x4x8x8xf32, #tpu.memory_space<vmem>>, vector<1x1x8x8xf32>
    %7 = vector.shape_cast %6 : vector<1x1x8x8xf32> to vector<8x8xf32>
    %cst_10 = arith.constant dense<0.000000e+00> : vector<8x8xf32>
    %8 = tpu.matmul %5, %7, %cst_10 {dimension_numbers = #tpu.dot_dimension_numbers<[1], [1], [0], [0], [0, 0, 1, 0], [], []>} : vector<8x8xf32>, vector<8x8xf32>, vector<8x8xf32> -> vector<8x8xf32>
    %9 = vector.broadcast %1 : vector<8x1xf32> to vector<8x8xf32>
    %10 = arith.addf %8, %9 : vector<8x8xf32>
    %cst_11 = arith.constant 0.000000e+00 : f32
    %11 = vector.broadcast %cst_11 : f32 to vector<8x8xf32>
    %12 = arith.maximumf %10, %11 : vector<8x8xf32>
    %c0_12 = arith.constant 0 : index
    %c0_13 = arith.constant 0 : index
    %c0_14 = arith.constant 0 : index
    %c0_15 = arith.constant 0 : index
    %13 = vector.load %arg6[%c0_12, %c0_13, %c0_14, %c0_15] : memref<1x8x4x8xf32, #tpu.memory_space<vmem>>, vector<1x8x1x8xf32>
    %14 = vector.shape_cast %13 : vector<1x8x1x8xf32> to vector<8x8xf32>
    %15 = vector.shape_cast %12 : vector<8x8xf32> to vector<1x8x1x8xf32>
    tpu.vector_store %arg6[%c0_12, %c0_13, %c0_14, %c0_15], %15 {strides = array<i32>} : memref<1x8x4x8xf32, #tpu.memory_space<vmem>>, vector<1x8x1x8xf32>,
    %c0_16 = arith.constant 0 : index
    %c1 = arith.constant 1 : index
    %c0_17 = arith.constant 0 : index
    %c0_18 = arith.constant 0 : index
    %16 = vector.load %arg3[%c0_16, %c1, %c0_17, %c0_18] : memref<1x4x8x8xf32, #tpu.memory_space<vmem>>, vector<1x1x8x8xf32>
    %17 = vector.shape_cast %16 : vector<1x1x8x8xf32> to vector<8x8xf32>
    %cst_19 = arith.constant 0.353553385 : f32
    %18 = vector.broadcast %cst_19 : f32 to vector<8x8xf32>
    %19 = arith.mulf %17, %18 : vector<8x8xf32>
    %c0_20 = arith.constant 0 : index
    %c1_21 = arith.constant 1 : index
    %c0_22 = arith.constant 0 : index
    %c0_23 = arith.constant 0 : index
    %20 = vector.load %arg4[%c0_20, %c1_21, %c0_22, %c0_23] : memref<1x4x8x8xf32, #tpu.memory_space<vmem>>, vector<1x1x8x8xf32>
    %21 = vector.shape_cast %20 : vector<1x1x8x8xf32> to vector<8x8xf32>
    %cst_24 = arith.constant dense<0.000000e+00> : vector<8x8xf32>
    %22 = tpu.matmul %19, %21, %cst_24 {dimension_numbers = #tpu.dot_dimension_numbers<[1], [1], [0], [0], [0, 0, 1, 0], [], []>} : vector<8x8xf32>, vector<8x8xf32>, vector<8x8xf32> -> vector<8x8xf32>
    %23 = vector.broadcast %1 : vector<8x1xf32> to vector<8x8xf32>
    %24 = arith.addf %22, %23 : vector<8x8xf32>
    %cst_25 = arith.constant 0.000000e+00 : f32
    %25 = vector.broadcast %cst_25 : f32 to vector<8x8xf32>
    %26 = arith.maximumf %24, %25 : vector<8x8xf32>
    %c0_26 = arith.constant 0 : index
    %c0_27 = arith.constant 0 : index
    %c1_28 = arith.constant 1 : index
    %c0_29 = arith.constant 0 : index
    %27 = vector.load %arg6[%c0_26, %c0_27, %c1_28, %c0_29] : memref<1x8x4x8xf32, #tpu.memory_space<vmem>>, vector<1x8x1x8xf32>
    %28 = vector.shape_cast %27 : vector<1x8x1x8xf32> to vector<8x8xf32>
    %29 = vector.shape_cast %26 : vector<8x8xf32> to vector<1x8x1x8xf32>
    tpu.vector_store %arg6[%c0_26, %c0_27, %c1_28, %c0_29], %29 {strides = array<i32>} : memref<1x8x4x8xf32, #tpu.memory_space<vmem>>, vector<1x8x1x8xf32>,
    %c0_30 = arith.constant 0 : index
    %c2 = arith.constant 2 : index
    %c0_31 = arith.constant 0 : index
    %c0_32 = arith.constant 0 : index
    %30 = vector.load %arg3[%c0_30, %c2, %c0_31, %c0_32] : memref<1x4x8x8xf32, #tpu.memory_space<vmem>>, vector<1x1x8x8xf32>
    %31 = vector.shape_cast %30 : vector<1x1x8x8xf32> to vector<8x8xf32>
    %cst_33 = arith.constant 0.353553385 : f32
    %32 = vector.broadcast %cst_33 : f32 to vector<8x8xf32>
    %33 = arith.mulf %31, %32 : vector<8x8xf32>
    %c0_34 = arith.constant 0 : index
    %c2_35 = arith.constant 2 : index
    %c0_36 = arith.constant 0 : index
    %c0_37 = arith.constant 0 : index
    %34 = vector.load %arg4[%c0_34, %c2_35, %c0_36, %c0_37] : memref<1x4x8x8xf32, #tpu.memory_space<vmem>>, vector<1x1x8x8xf32>
    %35 = vector.shape_cast %34 : vector<1x1x8x8xf32> to vector<8x8xf32>
    %cst_38 = arith.constant dense<0.000000e+00> : vector<8x8xf32>
    %36 = tpu.matmul %33, %35, %cst_38 {dimension_numbers = #tpu.dot_dimension_numbers<[1], [1], [0], [0], [0, 0, 1, 0], [], []>} : vector<8x8xf32>, vector<8x8xf32>, vector<8x8xf32> -> vector<8x8xf32>
    %37 = vector.broadcast %1 : vector<8x1xf32> to vector<8x8xf32>
    %38 = arith.addf %36, %37 : vector<8x8xf32>
    %cst_39 = arith.constant 0.000000e+00 : f32
    %39 = vector.broadcast %cst_39 : f32 to vector<8x8xf32>
    %40 = arith.maximumf %38, %39 : vector<8x8xf32>
    %c0_40 = arith.constant 0 : index
    %c0_41 = arith.constant 0 : index
    %c2_42 = arith.constant 2 : index
    %c0_43 = arith.constant 0 : index
    %41 = vector.load %arg6[%c0_40, %c0_41, %c2_42, %c0_43] : memref<1x8x4x8xf32, #tpu.memory_space<vmem>>, vector<1x8x1x8xf32>
    %42 = vector.shape_cast %41 : vector<1x8x1x8xf32> to vector<8x8xf32>
    %43 = vector.shape_cast %40 : vector<8x8xf32> to vector<1x8x1x8xf32>
    tpu.vector_store %arg6[%c0_40, %c0_41, %c2_42, %c0_43], %43 {strides = array<i32>} : memref<1x8x4x8xf32, #tpu.memory_space<vmem>>, vector<1x8x1x8xf32>,
    %c0_44 = arith.constant 0 : index
    %c3 = arith.constant 3 : index
    %c0_45 = arith.constant 0 : index
    %c0_46 = arith.constant 0 : index
    %44 = vector.load %arg3[%c0_44, %c3, %c0_45, %c0_46] : memref<1x4x8x8xf32, #tpu.memory_space<vmem>>, vector<1x1x8x8xf32>
    %45 = vector.shape_cast %44 : vector<1x1x8x8xf32> to vector<8x8xf32>
    %cst_47 = arith.constant 0.353553385 : f32
    %46 = vector.broadcast %cst_47 : f32 to vector<8x8xf32>
    %47 = arith.mulf %45, %46 : vector<8x8xf32>
    %c0_48 = arith.constant 0 : index
    %c3_49 = arith.constant 3 : index
    %c0_50 = arith.constant 0 : index
    %c0_51 = arith.constant 0 : index
    %48 = vector.load %arg4[%c0_48, %c3_49, %c0_50, %c0_51] : memref<1x4x8x8xf32, #tpu.memory_space<vmem>>, vector<1x1x8x8xf32>
    %49 = vector.shape_cast %48 : vector<1x1x8x8xf32> to vector<8x8xf32>
    %cst_52 = arith.constant dense<0.000000e+00> : vector<8x8xf32>
    %50 = tpu.matmul %47, %49, %cst_52 {dimension_numbers = #tpu.dot_dimension_numbers<[1], [1], [0], [0], [0, 0, 1, 0], [], []>} : vector<8x8xf32>, vector<8x8xf32>, vector<8x8xf32> -> vector<8x8xf32>
    %51 = vector.broadcast %1 : vector<8x1xf32> to vector<8x8xf32>
    %52 = arith.addf %50, %51 : vector<8x8xf32>
    %cst_53 = arith.constant 0.000000e+00 : f32
    %53 = vector.broadcast %cst_53 : f32 to vector<8x8xf32>
    %54 = arith.maximumf %52, %53 : vector<8x8xf32>
    %c0_54 = arith.constant 0 : index
    %c0_55 = arith.constant 0 : index
    %c3_56 = arith.constant 3 : index
    %c0_57 = arith.constant 0 : index
    %55 = vector.load %arg6[%c0_54, %c0_55, %c3_56, %c0_57] : memref<1x8x4x8xf32, #tpu.memory_space<vmem>>, vector<1x8x1x8xf32>
    %56 = vector.shape_cast %55 : vector<1x8x1x8xf32> to vector<8x8xf32>
    %57 = vector.shape_cast %54 : vector<8x8xf32> to vector<1x8x1x8xf32>
    tpu.vector_store %arg6[%c0_54, %c0_55, %c3_56, %c0_57], %57 {strides = array<i32>} : memref<1x8x4x8xf32, #tpu.memory_space<vmem>>, vector<1x8x1x8xf32>,
    return
  }
  func.func @transform_0(%arg0: i32, %arg1: i32, %arg2: i32) -> (i32, i32, i32, i32) {
    %c0_i32 = arith.constant 0 : i32
    %c0_i32_0 = arith.constant 0 : i32
    %c0_i32_1 = arith.constant 0 : i32
    return %arg0, %c0_i32, %arg1, %c0_i32_0 : i32, i32, i32, i32
  }
  func.func @transform_1(%arg0: i32, %arg1: i32, %arg2: i32) -> (i32, i32, i32, i32) {
    %c0_i32 = arith.constant 0 : i32
    %c0_i32_0 = arith.constant 0 : i32
    %c0_i32_1 = arith.constant 0 : i32
    return %arg0, %c0_i32, %arg2, %c0_i32_0 : i32, i32, i32, i32
  }
  func.func @transform_2(%arg0: i32, %arg1: i32, %arg2: i32) -> (i32, i32, i32) {
    %c0_i32 = arith.constant 0 : i32
    %c0_i32_0 = arith.constant 0 : i32
    return %arg0, %arg1, %c0_i32 : i32, i32, i32
  }
  func.func @transform_3(%arg0: i32, %arg1: i32, %arg2: i32) -> (i32, i32, i32, i32) {
    %c0_i32 = arith.constant 0 : i32
    %c0_i32_0 = arith.constant 0 : i32
    return %arg0, %arg1, %c0_i32, %arg2 : i32, i32, i32, i32
  }
}

module attributes {stable_mosaic.version = 11 : i64} {
  func.func @_scores_kernel_hqk(%arg0: i32, %arg1: i32, %arg2: i32, %arg3: memref<1x4x8x8xf32, #tpu.memory_space<vmem>>, %arg4: memref<1x4x8x8xf32, #tpu.memory_space<vmem>>, %arg5: memref<1x8x1xf32, #tpu.memory_space<vmem>>, %arg6: memref<1x4x8x8xf32, #tpu.memory_space<vmem>>) attributes {dimension_semantics = [#tpu.dimension_semantics<parallel>, #tpu.dimension_semantics<parallel>, #tpu.dimension_semantics<parallel>], iteration_bounds = array<i64: 2, 1, 1>, scalar_prefetch = 0 : i64, scratch_operands = 0 : i64, tpu.core_type = #tpu.core_type<tc>, window_params = [{transform_indices = @transform_0, window_bounds = array<i64: 1, 4, 8, 8>}, {transform_indices = @transform_1, window_bounds = array<i64: 1, 4, 8, 8>}, {transform_indices = @transform_2, window_bounds = array<i64: 1, 8, 1>}, {transform_indices = @transform_3, window_bounds = array<i64: 1, 4, 8, 8>}]} {
    %c0 = arith.constant 0 : index
    %c0_0 = arith.constant 0 : index
    %c0_1 = arith.constant 0 : index
    %c0_2 = arith.constant 0 : index
    %0 = vector.load %arg3[%c0, %c0_0, %c0_1, %c0_2] : memref<1x4x8x8xf32, #tpu.memory_space<vmem>>, vector<1x4x8x8xf32>
    %1 = vector.shape_cast %0 : vector<1x4x8x8xf32> to vector<4x8x8xf32>
    %cst = arith.constant 0.353553385 : f32
    %2 = vector.broadcast %cst : f32 to vector<4x8x8xf32>
    %3 = arith.mulf %1, %2 : vector<4x8x8xf32>
    %c0_3 = arith.constant 0 : index
    %c0_4 = arith.constant 0 : index
    %c0_5 = arith.constant 0 : index
    %c0_6 = arith.constant 0 : index
    %4 = vector.load %arg4[%c0_3, %c0_4, %c0_5, %c0_6] : memref<1x4x8x8xf32, #tpu.memory_space<vmem>>, vector<1x4x8x8xf32>
    %5 = vector.shape_cast %4 : vector<1x4x8x8xf32> to vector<4x8x8xf32>
    %cst_7 = arith.constant dense<0.000000e+00> : vector<4x8x8xf32>
    %6 = tpu.matmul %3, %5, %cst_7 {dimension_numbers = #tpu.dot_dimension_numbers<[2], [2], [1], [1], [0, 0, 0, 1, 1, 1], [0], [0]>} : vector<4x8x8xf32>, vector<4x8x8xf32>, vector<4x8x8xf32> -> vector<4x8x8xf32>
    %c0_8 = arith.constant 0 : index
    %c0_9 = arith.constant 0 : index
    %c0_10 = arith.constant 0 : index
    %7 = vector.load %arg5[%c0_8, %c0_9, %c0_10] : memref<1x8x1xf32, #tpu.memory_space<vmem>>, vector<1x8x1xf32>
    %8 = vector.shape_cast %7 : vector<1x8x1xf32> to vector<8x1xf32>
    %9 = vector.shape_cast %8 : vector<8x1xf32> to vector<1x8x1xf32>
    %10 = vector.broadcast %9 : vector<1x8x1xf32> to vector<4x8x8xf32>
    %11 = arith.addf %6, %10 : vector<4x8x8xf32>
    %cst_11 = arith.constant 0.000000e+00 : f32
    %12 = vector.broadcast %cst_11 : f32 to vector<4x8x8xf32>
    %13 = arith.maximumf %11, %12 : vector<4x8x8xf32>
    %c0_12 = arith.constant 0 : index
    %c0_13 = arith.constant 0 : index
    %c0_14 = arith.constant 0 : index
    %c0_15 = arith.constant 0 : index
    %14 = vector.load %arg6[%c0_12, %c0_13, %c0_14, %c0_15] : memref<1x4x8x8xf32, #tpu.memory_space<vmem>>, vector<1x4x8x8xf32>
    %15 = vector.shape_cast %14 : vector<1x4x8x8xf32> to vector<4x8x8xf32>
    %16 = vector.shape_cast %13 : vector<4x8x8xf32> to vector<1x4x8x8xf32>
    tpu.vector_store %arg6[%c0_12, %c0_13, %c0_14, %c0_15], %16 {strides = array<i32>} : memref<1x4x8x8xf32, #tpu.memory_space<vmem>>, vector<1x4x8x8xf32>,
    return
  }
  func.func @transform_0(%arg0: i32, %arg1: i32, %arg2: i32) -> (i32, i32, i32, i32) {
    %c0_i32 = arith.constant 0 : i32
    %c0_i32_0 = arith.constant 0 : i32
    %c0_i32_1 = arith.constant 0 : i32
    return %arg0, %c0_i32, %arg1, %c0_i32_0 : i32, i32, i32, i32
  }
  func.func @transform_1(%arg0: i32, %arg1: i32, %arg2: i32) -> (i32, i32, i32, i32) {
    %c0_i32 = arith.constant 0 : i32
    %c0_i32_0 = arith.constant 0 : i32
    %c0_i32_1 = arith.constant 0 : i32
    return %arg0, %c0_i32, %arg2, %c0_i32_0 : i32, i32, i32, i32
  }
  func.func @transform_2(%arg0: i32, %arg1: i32, %arg2: i32) -> (i32, i32, i32) {
    %c0_i32 = arith.constant 0 : i32
    %c0_i32_0 = arith.constant 0 : i32
    return %arg0, %arg1, %c0_i32 : i32, i32, i32
  }
  func.func @transform_3(%arg0: i32, %arg1: i32, %arg2: i32) -> (i32, i32, i32, i32) {
    %c0_i32 = arith.constant 0 : i32
    %c0_i32_0 = arith.constant 0 : i32
    return %arg0, %c0_i32, %arg1, %arg2 : i32, i32, i32, i32
  }
}

</mosaic_0001>

<bundles_post_ra>
// kernel: sparse_attention.1
= control target key start
LH: loop header
LB: loop body
LE: loop exit
PB: predicated region body
PF: predicated region fallthrough
CT: control target
= control target key end

     0   :  { %8 = vsyncpa [#allocation3], 0  ;;  %s919_s0 = inlined_call_operand.vmem [shape: f32[2,4,8,8], index: 0, kind: input, shape index: {}]   ;;  %s920_s1 = inlined_call_operand.vmem [shape: f32[2,4,8,8], index: 1, kind: input, shape index: {}]   ;;  %s921_s2 = inlined_call_operand.vmem [shape: f32[2,8,1], index: 2, kind: input, shape index: {}]   ;;  %s922_s3 = inlined_call_operand.hbm [shape: f32[2,8,4,8], index: 3, kind: output, shape index: {}]  }
   0x1   :  { %10 = vsyncpa [#allocation3 + $0x1], 0  ;;  %s784_s12 = smov 0   ;;  %s786_s13 = smov 0  }
   0x2   :  { %s788_s14 = smov 0   ;;  %s790_s15 = smov 0  }
   0x3   :  { %s792_s16 = smov 0   ;;  %s794_s17 = smov 0  }
   0x4 LB: > { %s591_s18 = sadd.s32 4294967295, %s757_s17   ;;  %s592_s19 = sadd.s32 4294967294, %s757_s17   ;;  %s757_s17 = sphi %s794_s17, %s16_s17   ;;  %s753_s16 = sphi %s792_s16, %s929_s16   ;;  %s749_s15 = sphi %s790_s15, %s928_s15   ;;  %s745_s14 = sphi %s788_s14, %s927_s14   ;;  %s741_s13 = sphi %s786_s13, %s926_s13   ;;  %s737_s12 = sphi %s784_s12, %s925_s12  }
   0x5   : > { %s35_s20 = sadd.s32 1, %s753_s16  ;;  %s130_s21 = sadd.s32 1, %s745_s14 }
   0x6   : > { %p37_p0 = scmp.ge.s32.totalorder %s35_s20, 2  ;;  %p140_p1 = scmp.ne.s32.totalorder %s745_s14, %s741_s13 }
   0x7   : > { %p141_p2 = scmp.eq.s32.totalorder %s591_s18, 1  ;;  %p146_p3 = scmp.ne.s32.totalorder %s741_s13, %s737_s12 }
   0x8   : > { %s931_s20 = smov (%p37_p0, %s35_s20), 0  ;;  %p147_p5 = scmp.eq.s32.totalorder %s592_s19, 1 }
   0x9   : > { %p824_p4 = por %p141_p2, %p140_p1  ;;  %s123_s23 = ssub.s32 %s753_s16, %s931_s20 }
   0xa   : > { %p595_p6 = scmp.ge.s32.totalorder %s757_s17, 1  ;;  %p128_p7 = scmp.eq.s32.totalorder %s123_s23, 0 }
   0xb   : > { %p831_p8 = por %p147_p5, %p146_p3  ;;  %p197_p9 = scmp.lt.s32.totalorder %s757_s17, 3 }
   0xc   : > { %s837_s25 = scalar_select %p128_p7, %s745_s14, %s130_s21  }
   0xd   : > { %p198_p10 = pnand %p595_p6, %p197_p9 }
   0xe   : > { %p239_p11 = scmp.lt.s32.totalorder (!%p198_p10), %s749_s15, 1  ;;  %s236_s11 = sand.u32 (!%p198_p10), 1, %s741_s13  }
   0xf   : > { %201 = sbr.rel (%p198_p10) target bundleno = 183 (0xb7), region = 32  ;;  %s596_s18 = sshll.u32 (!%p198_p10), %s236_s11, 5 }
  0x10   : > { %s617_s19 = sshll.u32 (!%p198_p10), %s749_s15, 5  ;;  %s457_s29 = scalar_lea.sflag (!%p198_p10), [#allocation3], %s236_s11 }
  0x14   : > { %v759_v0 = vmov 0   ;;  %s240_s26 = scalar_select %p239_p11, %s749_s15, 1  ;;  %vm281_vm0 = vcmask 64512   ;;  %v760_v21 = vmov 1983009808   ;;  %vm391_vm1 = vcmask 1047556  }
  0x15   : > { %678 = vset.pattern.permute.xlu0 %v759_v0  ;;  %v396_v22 = vunpack.c.l.s4 %v760_v21  ;;  %v761_v32 = vmov 1934713408   ;;  %vm447_vm2 = vcmask 60416   ;;  %s238_s15 = scalar_lea.vmem [#allocation2], %s596_s18 }
  0x16   : > { %s615_s27 = sshll.u32 %s240_s26, 5  ;;  %s601_s28 = sshll.u32 %s240_s26, 3  ;;  %v420_v33 = vunpack.c.l.s4 %v761_v32 }
  0x17   : > { %s246_s4 = scalar_lea.vmem %s919_s0, %s615_s27  ;;  %s254_s7 = scalar_lea.vmem %s920_s1, %s615_s27  ;;  %v397_v29 = vunpack.c.0.s8 %v396_v22 }
  0x18   : > { %v274_v1 = vld [vmem:[%s254_s7 + $0x10] sm:$0xff]  ;;  %v275_v2 = vld [vmem:[%s254_s7 + $0x18] sm:$0xff]  ;;  %s261_s10 = scalar_lea.vmem %s921_s2, %s601_s28  ;;  %v272_v6 = vld [vmem:[%s254_s7] sm:$0xff]  ;;  %v421_v42 = vunpack.c.0.s8 %v420_v33  ;;  %s471_s26 = scalar_lea.hbm %s922_s3, %s617_s19 }
  0x19   : > { %v266_v3 = vld [vmem:[%s246_s4 + $0x10] sm:$0xff]  ;;  %606 = vmatpush.xpose.msk.msra.mxu2 %vm281_vm0, %v274_v1  ;;  %608 = vmatpush.xpose.msk.msra.mxu3 %vm281_vm0, %v275_v2  ;;  %v267_v5 = vld [vmem:[%s246_s4 + $0x18] sm:$0xff]  ;;  %v273_v7 = vld [vmem:[%s254_s7 + $0x8] sm:$0xff]  ;;  %s472_s27 = sshll.u32 %s238_s15, 4  ;;  %s474_s28 = sshll.u32 %s471_s26, 4  ;;  %s473_s27 = int_to_ptr.vmem [resolvable:$true] %s472_s27  ;;  %s475_s28 = int_to_ptr.hbm [resolvable:$true] %s474_s28 }
  0x1a   : > { %v270_v4 = vmul.f32 0.35355338, %v266_v3  ;;  %v271_v8 = vmul.f32 0.35355338, %v267_v5  ;;  %602 = vmatpush.xpose.msk.msra.mxu0 %vm281_vm0, %v272_v6  ;;  %604 = vmatpush.xpose.msk.msra.mxu1 %vm281_vm0, %v273_v7  ;;  %v264_v9 = vld [vmem:[%s246_s4] sm:$0xff]  ;;  %v265_v10 = vld [vmem:[%s246_s4 + $0x8] sm:$0xff] }
  0x1b   : > { %v263_v11 = vld [vmem:[%s261_s10] sm:$0xff]  ;;  %v268_v12 = vmul.f32 0.35355338, %v264_v9  ;;  %v269_v13 = vmul.f32 0.35355338, %v265_v10  ;;  %s693_s30 = sshra.s32 %s475_s28, 4  ;;  %s694_s30 = int_to_ptr.hbm [resolvable:$true] %s693_s30 }
  0x1c   : > { %278 = vperm.xlu0 %678, %v263_v11   ;;  %607 = vmatmul.msk.f32.vlgmr.msra.gmra.mxu2 %vm281_vm0, %v270_v4  ;;  %s695_s4 = scalar_lea.hbm %s694_s30, 32  ;;  %s699_s7 = scalar_lea.hbm %s922_s3, 64 }
  0x1d   : > { %609 = vmatmul.msk.f32.vlgmr.msra.gmra.mxu3 %vm281_vm0, %v271_v8  ;;  %603 = vmatmul.msk.f32.vlgmr.msra.gmra.mxu0 %vm281_vm0, %v268_v12  ;;  %p696_p12 = scmp.ne.s32.totalorder %s694_s30, %s695_s4  ;;  %p700_p1 = scmp.lt.s32.totalorder %s694_s30, %s922_s3 }
  0x1e   : > { %605 = vmatmul.msk.f32.vlgmr.msra.gmra.mxu1 %vm281_vm0, %v269_v13  ;;  %p701_p2 = scmp.lt.s32.totalorder %s699_s7, %s695_s4 }
  0x1f   : > { %p697_p13 = pnand %p696_p12, %p824_p4 }
  0x20   : > { %p702_p3 = por %p701_p2, %p700_p1 }
  0x21   : > { %p698_p0 = pneg %p697_p13 }
  0x23   : > { %p703_p5 = pnand %p702_p3, %p698_p0 }
  0x8e   : > { %v279_v14 = vpop.permute.xlu0 %278 }
  0x9a   : > { %v305_v15 = vpop.f32.mrf.mxu0 }
  0x9b   : > { %v331_v16 = vpop.f32.mrf.mxu1  ;;  %v306_v17 = vadd.f32 %v305_v15, %v279_v14 }
  0x9c   : > { %v332_v18 = vadd.f32 %v331_v16, %v279_v14 }
  0x9d   : > { %v386_v19 = vmax.f32 %v306_v17, 0.0 }
  0x9e   : > { %v387_v20 = vmax.f32 %v332_v18, 0.0 }
  0x9f   : > { %v357_v23 = vpop.f32.mrf.mxu2  ;;  %v393_v25 = vrot.slane %v386_v19, 4 }
  0xa0   : > { %v383_v24 = vpop.f32.mrf.mxu3  ;;  %v405_v26 = vrot.slane %v387_v20, 4  ;;  %v358_v27 = vadd.f32 %v357_v23, %v279_v14 }
  0xa1   : > { %v384_v28 = vadd.f32 %v383_v24, %v279_v14 }
  0xa2   : > { %v388_v30 = vmax.f32 %v358_v27, 0.0 }
  0xa3   : > { %v389_v31 = vmax.f32 %v384_v28, 0.0 }
  0xa4   : > { %v390_v34 = vrot.slane %v388_v30, 4  ;;  %v394_v35 = vsel %vm391_vm1, %v388_v30, %v393_v25 }
  0xa5   : > { %v403_v36 = vrot.slane %v389_v31, 4  ;;  %v406_v37 = vsel %vm391_vm1, %v389_v31, %v405_v26  ;;  %v402_v38 = vperm.slane %v394_v35, %v397_v29 }
  0xa6   : > { %v414_v39 = vperm.slane %v406_v37, %v397_v29  ;;  %v392_v40 = vsel %vm391_vm1, %v390_v34, %v386_v19 }
  0xa7   : > { %v404_v41 = vsel %vm391_vm1, %v403_v36, %v387_v20  ;;  %v398_v43 = vperm.slane %v392_v40, %v397_v29  ;;  %v429_v44 = vrot.slane %v402_v38, 4 }
  0xa8   : > { %v410_v45 = vperm.slane %v404_v41, %v397_v29  ;;  %v427_v46 = vrot.slane %v414_v39, 4 }
  0xa9   : > { %v417_v47 = vrot.slane %v398_v43, 4  ;;  %v430_v50 = vsel %vm391_vm1, %v414_v39, %v429_v44 }
  0xaa   : > { %v415_v48 = vrot.slane %v410_v45, 4  ;;  %v428_v49 = vsel %vm391_vm1, %v427_v46, %v402_v38  ;;  %v438_v52 = vperm.slane %v430_v50, %v421_v42 }
  0xab   : > { %v434_v51 = vperm.slane %v428_v49, %v421_v42  ;;  %v418_v54 = vsel %vm391_vm1, %v410_v45, %v417_v47 }
  0xac   : > { %v416_v53 = vsel %vm391_vm1, %v415_v48, %v398_v43  ;;  %v426_v56 = vperm.slane %v418_v54, %v421_v42  ;;  %v445_v58 = vrot.slane %v438_v52, 4  ;;  %454 = vst.msk [vmem:[%s238_s15 + $0x18] sm:$0xf] %vm447_vm2, %v438_v52 }
  0xad   : > { %v422_v55 = vperm.slane %v416_v53, %v421_v42  ;;  %v443_v57 = vrot.slane %v434_v51, 4  ;;  %452 = vst.msk [vmem:[%s238_s15 + $0x10] sm:$0xf] %vm447_vm2, %v434_v51 }
  0xae   : > { %v441_v60 = vrot.slane %v426_v56, 4  ;;  %450 = vst.msk [vmem:[%s238_s15 + $0x8] sm:$0xf] %vm447_vm2, %v426_v56  ;;  %v446_v0 = vsel %vm391_vm1, 0.0, %v445_v58 }
  0xaf   : > { %v439_v59 = vrot.slane %v422_v55, 4  ;;  %v444_v61 = vsel %vm391_vm1, 0.0, %v443_v57  ;;  %448 = vst.msk [vmem:[%s238_s15] sm:$0xf] %vm447_vm2, %v422_v55 }
  0xb0   : > { %v442_v63 = vsel %vm391_vm1, 0.0, %v441_v60  ;;  %453 = vst.msk [vmem:[%s238_s15 + $0x14] sm:$0xf] %vm447_vm2, %v444_v61 }
  0xb1   : > { %v440_v62 = vsel %vm391_vm1, 0.0, %v439_v59  ;;  %451 = vst.msk [vmem:[%s238_s15 + $0xc] sm:$0xf] %vm447_vm2, %v442_v63 }
  0xb2   : > { %449 = vst.msk [vmem:[%s238_s15 + $0x4] sm:$0xf] %vm447_vm2, %v440_v62 }
  0xb3   : > { %455 = vst.msk [vmem:[%s238_s15 + $0x1c] sm:$0xf] %vm447_vm2, %v446_v0 }
  0xb4   : > { %706 = shalt.err (!%p703_p5)
}
  0xb5   : > { %s762_s10 = smov 64   ;;  %s763_s11 = smov 4  }
  0xb6   : > { %618 = dma.vmem_to_hbm [thread:$0]  (%p824_p4), %s473_s27, 512, %s475_s28, %s457_s29, %s762_s10, %s762_s10, %s763_s11  }
  0xb7 PF: > { %p624_p6 = scmp.ge.s32.totalorder %s757_s17, 2  ;;  %s489_s18 = sand.u32 1, %s737_s12  }
  0xb8   : > { %s490_s19 = scalar_lea.sflag [#allocation3], %s489_s18 }
  0xb9   : > { %p621_p7 = pnand %p624_p6, %p831_p8 }
  0xbb   : > { %p622_p9 = pneg %p621_p7 }
  0xbd   : > { %732 = dma.done.wait (%p622_p9), %s490_s19, 512  }
  0xbe   : > { %734 = vsyncadd (%p622_p9), %s490_s19, 4294966784  ;;  %s16_s17 = sadd.s32 1, %s757_s17   ;;  %s925_s12 = smov %s741_s13 }
  0xbf   : > { %p13_p10 = scmp.ge.s32.totalorder %s16_s17, 4   ;;  %s926_s13 = smov %s745_s14 }
  0xc0   : > { %s927_s14 = smov %s837_s25  ;;  %s928_s15 = smov %s753_s16 }
  0xc1   : > { %s929_s16 = smov %s931_s20  ;;  %15 = sbr.rel (!%p13_p10) target bundleno = 4 (0x4), region = 73 }
  0xc6   :  { %496 = vsyncpa [#allocation3], 1 }
  0xc7   :  { %498 = vsyncpa [#allocation3 + $0x1], 1 }

// kernel: sparse_attention.1
= control target key start
LH: loop header
LB: loop body
LE: loop exit
PB: predicated region body
PF: predicated region fallthrough
CT: control target
= control target key end

     0   :  { %8 = vsyncpa [#allocation3], 0  ;;  %s1001_s0 = inlined_call_operand.vmem [shape: f32[2,4,8,8], index: 0, kind: input, shape index: {}]   ;;  %s1002_s1 = inlined_call_operand.vmem [shape: f32[2,4,8,8], index: 1, kind: input, shape index: {}]   ;;  %s1003_s2 = inlined_call_operand.vmem [shape: f32[2,8,1], index: 2, kind: input, shape index: {}]   ;;  %s1004_s3 = inlined_call_operand.hbm [shape: f32[2,8,4,8], index: 3, kind: output, shape index: {}]  }
   0x1   :  { %10 = vsyncpa [#allocation3 + $0x1], 0  ;;  %s819_s12 = smov 0   ;;  %s821_s13 = smov 0  }
   0x2   :  { %s823_s14 = smov 0   ;;  %s825_s15 = smov 0  }
   0x3   :  { %s827_s16 = smov 0   ;;  %s829_s17 = smov 0  }
   0x4 LB: > { %s624_s18 = sadd.s32 4294967295, %s794_s17   ;;  %s625_s19 = sadd.s32 4294967294, %s794_s17   ;;  %s794_s17 = sphi %s829_s17, %s16_s17   ;;  %s790_s16 = sphi %s827_s16, %s1011_s16   ;;  %s786_s15 = sphi %s825_s15, %s1010_s15   ;;  %s782_s14 = sphi %s823_s14, %s1009_s14   ;;  %s778_s13 = sphi %s821_s13, %s1008_s13   ;;  %s774_s12 = sphi %s819_s12, %s1007_s12  }
   0x5   : > { %s35_s20 = sadd.s32 1, %s790_s16  ;;  %s130_s21 = sadd.s32 1, %s782_s14 }
   0x6   : > { %p37_p0 = scmp.ge.s32.totalorder %s35_s20, 2  ;;  %p140_p1 = scmp.ne.s32.totalorder %s782_s14, %s778_s13 }
   0x7   : > { %p141_p2 = scmp.eq.s32.totalorder %s624_s18, 1  ;;  %p146_p3 = scmp.ne.s32.totalorder %s778_s13, %s774_s12 }
   0x8   : > { %s1013_s20 = smov (%p37_p0, %s35_s20), 0  ;;  %p147_p5 = scmp.eq.s32.totalorder %s625_s19, 1 }
   0x9   : > { %p859_p4 = por %p141_p2, %p140_p1  ;;  %s123_s23 = ssub.s32 %s790_s16, %s1013_s20 }
   0xa   : > { %p628_p6 = scmp.ge.s32.totalorder %s794_s17, 1  ;;  %p128_p7 = scmp.eq.s32.totalorder %s123_s23, 0 }
   0xb   : > { %p866_p8 = por %p147_p5, %p146_p3  ;;  %p197_p9 = scmp.lt.s32.totalorder %s794_s17, 3 }
   0xc   : > { %s872_s25 = scalar_select %p128_p7, %s782_s14, %s130_s21  }
   0xd   : > { %p198_p10 = pnand %p628_p6, %p197_p9 }
   0xe   : > { %p239_p11 = scmp.lt.s32.totalorder (!%p198_p10), %s786_s15, 1  ;;  %s236_s11 = sand.u32 (!%p198_p10), 1, %s778_s13  }
   0xf   : > { %201 = sbr.rel (%p198_p10) target bundleno = 194 (0xc2), region = 32  ;;  %s629_s18 = sshll.u32 (!%p198_p10), %s236_s11, 5 }
  0x10   : > { %s896_s19 = scalar_lea.vmem (!%p198_p10), [#allocation2], %s629_s18  ;;  %s656_s21 = sshll.u32 (!%p198_p10), %s786_s15, 5 }
  0x11   : > { %s490_s29 = scalar_lea.sflag (!%p198_p10), [#allocation3], %s236_s11 }
  0x14   : > { %v796_v0 = vmov 0   ;;  %s240_s26 = scalar_select %p239_p11, %s786_s15, 1  ;;  %vm272_vm0 = vcmask 64512   ;;  %vm315_vm1 = vcmask 57344  }
  0x15   : > { %715 = vset.pattern.permute.xlu0 %v796_v0  ;;  %s505_s15 = sshll.u32 %s896_s19, 4  ;;  %s506_s15 = int_to_ptr.vmem [resolvable:$true] %s505_s15 }
  0x16   : > { %s654_s27 = sshll.u32 %s240_s26, 5  ;;  %s634_s28 = sshll.u32 %s240_s26, 3 }
  0x17   : > { %s246_s4 = scalar_lea.vmem %s1001_s0, %s654_s27  ;;  %s254_s7 = scalar_lea.vmem %s1002_s1, %s654_s27 }
  0x18   : > { %v642_v1 = vld [vmem:[%s254_s7 + $0x10] sm:$0xff]  ;;  %v646_v2 = vld [vmem:[%s254_s7 + $0x18] sm:$0xff]  ;;  %s261_s10 = scalar_lea.vmem %s1003_s2, %s634_s28  ;;  %v266_v6 = vld [vmem:[%s254_s7] sm:$0xff]  ;;  %s504_s27 = scalar_lea.hbm %s1004_s3, %s656_s21 }
  0x19   : > { %v641_v3 = vld [vmem:[%s246_s4 + $0x10] sm:$0xff]  ;;  %643 = vmatpush.xpose.msk.msra.mxu2 %vm272_vm0, %v642_v1  ;;  %647 = vmatpush.xpose.msk.msra.mxu3 %vm272_vm0, %v646_v2  ;;  %v645_v5 = vld [vmem:[%s246_s4 + $0x18] sm:$0xff]  ;;  %v638_v7 = vld [vmem:[%s254_s7 + $0x8] sm:$0xff]  ;;  %s507_s28 = sshll.u32 %s504_s27, 4  ;;  %s736_s7 = scalar_lea.hbm %s1004_s3, 64  ;;  %s508_s28 = int_to_ptr.hbm [resolvable:$true] %s507_s28 }
  0x1a   : > { %v381_v4 = vmul.f32 0.35355338, %v641_v3  ;;  %v436_v8 = vmul.f32 0.35355338, %v645_v5  ;;  %635 = vmatpush.xpose.msk.msra.mxu0 %vm272_vm0, %v266_v6  ;;  %639 = vmatpush.xpose.msk.msra.mxu1 %vm272_vm0, %v638_v7  ;;  %v264_v9 = vld [vmem:[%s246_s4] sm:$0xff]  ;;  %v637_v10 = vld [vmem:[%s246_s4 + $0x8] sm:$0xff] }
  0x1b   : > { %v263_v11 = vld [vmem:[%s261_s10] sm:$0xff]  ;;  %v265_v12 = vmul.f32 0.35355338, %v264_v9  ;;  %v326_v13 = vmul.f32 0.35355338, %v637_v10  ;;  %s730_s30 = sshra.s32 %s508_s28, 4  ;;  %s731_s30 = int_to_ptr.hbm [resolvable:$true] %s730_s30 }
  0x1c   : > { %269 = vperm.xlu0 %715, %v263_v11   ;;  %644 = vmatmul.msk.f32.vlgmr.msra.gmra.mxu2 %vm272_vm0, %v381_v4  ;;  %s732_s4 = scalar_lea.hbm %s731_s30, 32  ;;  %p737_p1 = scmp.lt.s32.totalorder %s731_s30, %s1004_s3 }
  0x1d   : > { %648 = vmatmul.msk.f32.vlgmr.msra.gmra.mxu3 %vm272_vm0, %v436_v8  ;;  %636 = vmatmul.msk.f32.vlgmr.msra.gmra.mxu0 %vm272_vm0, %v265_v12  ;;  %p733_p12 = scmp.ne.s32.totalorder %s731_s30, %s732_s4  ;;  %p738_p2 = scmp.lt.s32.totalorder %s736_s7, %s732_s4 }
  0x1e   : > { %640 = vmatmul.msk.f32.vlgmr.msra.gmra.mxu1 %vm272_vm0, %v326_v13 }
  0x1f   : > { %p734_p13 = pnand %p733_p12, %p859_p4  ;;  %p739_p3 = por %p738_p2, %p737_p1 }
  0x21   : > { %p735_p0 = pneg %p734_p13 }
  0x23   : > { %p740_p5 = pnand %p739_p3, %p735_p0 }
  0x8e   : > { %v270_v14 = vpop.permute.xlu0 %269 }
  0x9a   : > { %v296_v15 = vpop.f32.mrf.mxu0 }
  0x9b   : > { %v352_v16 = vpop.f32.mrf.mxu1  ;;  %v297_v17 = vadd.f32 %v296_v15, %v270_v14 }
  0x9c   : > { %v353_v18 = vadd.f32 %v352_v16, %v270_v14 }
  0x9d   : > { %v299_v19 = vmax.f32 %v297_v17, 0.0 }
  0x9e   : > { %v355_v20 = vmax.f32 %v353_v18, 0.0 }
  0x9f   : > { %v301_v21 = vrot.slane %v299_v19, 1  ;;  %v302_v22 = vrot.slane %v299_v19, 2  ;;  %v303_v23 = vrot.slane %v299_v19, 3  ;;  %316 = vst.msk [vmem:[%s896_s19] sm:$0x1] %vm315_vm1, %v299_v19  ;;  %v304_v24 = vrot.slane %v299_v19, 4  ;;  %v407_v26 = vpop.f32.mrf.mxu2 }
  0xa0   : > { %371 = vst.msk [vmem:[%s896_s19 + $0x1] sm:$0x1] %vm315_vm1, %v355_v20  ;;  %v305_v25 = vrot.slane %v299_v19, 5  ;;  %v306_v27 = vrot.slane %v299_v19, 6  ;;  %v307_v28 = vrot.slane %v299_v19, 7  ;;  %v357_v29 = vrot.slane %v355_v20, 1  ;;  %v462_v37 = vpop.f32.mrf.mxu3 }
  0xa1   : > { %317 = vst.msk [vmem:[%s896_s19 + $0x4] sm:$0x1] %vm315_vm1, %v301_v21  ;;  %v408_v30 = vadd.f32 %v407_v26, %v270_v14  ;;  %v358_v31 = vrot.slane %v355_v20, 2  ;;  %v359_v32 = vrot.slane %v355_v20, 3  ;;  %v360_v33 = vrot.slane %v355_v20, 4 }
  0xa2   : > { %318 = vst.msk [vmem:[%s896_s19 + $0x8] sm:$0x1] %vm315_vm1, %v302_v22  ;;  %v361_v34 = vrot.slane %v355_v20, 5  ;;  %v362_v36 = vrot.slane %v355_v20, 6  ;;  %v363_v38 = vrot.slane %v355_v20, 7  ;;  %v463_v40 = vadd.f32 %v462_v37, %v270_v14 }
  0xa3   : > { %319 = vst.msk [vmem:[%s896_s19 + $0xc] sm:$0x1] %vm315_vm1, %v303_v23  ;;  %v410_v35 = vmax.f32 %v408_v30, 0.0 }
  0xa4   : > { %320 = vst.msk [vmem:[%s896_s19 + $0x10] sm:$0x1] %vm315_vm1, %v304_v24  ;;  %v465_v45 = vmax.f32 %v463_v40, 0.0 }
  0xa5   : > { %321 = vst.msk [vmem:[%s896_s19 + $0x14] sm:$0x1] %vm315_vm1, %v305_v25  ;;  %v412_v39 = vrot.slane %v410_v35, 1  ;;  %v413_v41 = vrot.slane %v410_v35, 2  ;;  %v414_v42 = vrot.slane %v410_v35, 3  ;;  %v415_v43 = vrot.slane %v410_v35, 4 }
  0xa6   : > { %322 = vst.msk [vmem:[%s896_s19 + $0x18] sm:$0x1] %vm315_vm1, %v306_v27  ;;  %v416_v44 = vrot.slane %v410_v35, 5  ;;  %v417_v46 = vrot.slane %v410_v35, 6  ;;  %v418_v47 = vrot.slane %v410_v35, 7  ;;  %v467_v48 = vrot.slane %v465_v45, 1 }
  0xa7   : > { %323 = vst.msk [vmem:[%s896_s19 + $0x1c] sm:$0x1] %vm315_vm1, %v307_v28  ;;  %v468_v49 = vrot.slane %v465_v45, 2  ;;  %v469_v50 = vrot.slane %v465_v45, 3  ;;  %v470_v51 = vrot.slane %v465_v45, 4  ;;  %v471_v52 = vrot.slane %v465_v45, 5 }
  0xa8   : > { %372 = vst.msk [vmem:[%s896_s19 + $0x5] sm:$0x1] %vm315_vm1, %v357_v29  ;;  %v472_v53 = vrot.slane %v465_v45, 6  ;;  %v473_v54 = vrot.slane %v465_v45, 7 }
  0xa9   : > { %373 = vst.msk [vmem:[%s896_s19 + $0x9] sm:$0x1] %vm315_vm1, %v358_v31 }
  0xaa   : > { %374 = vst.msk [vmem:[%s896_s19 + $0xd] sm:$0x1] %vm315_vm1, %v359_v32 }
  0xab   : > { %375 = vst.msk [vmem:[%s896_s19 + $0x11] sm:$0x1] %vm315_vm1, %v360_v33 }
  0xac   : > { %376 = vst.msk [vmem:[%s896_s19 + $0x15] sm:$0x1] %vm315_vm1, %v361_v34 }
  0xad   : > { %377 = vst.msk [vmem:[%s896_s19 + $0x19] sm:$0x1] %vm315_vm1, %v362_v36 }
  0xae   : > { %378 = vst.msk [vmem:[%s896_s19 + $0x1d] sm:$0x1] %vm315_vm1, %v363_v38 }
  0xaf   : > { %426 = vst.msk [vmem:[%s896_s19 + $0x2] sm:$0x1] %vm315_vm1, %v410_v35 }
  0xb0   : > { %427 = vst.msk [vmem:[%s896_s19 + $0x6] sm:$0x1] %vm315_vm1, %v412_v39 }
  0xb1   : > { %428 = vst.msk [vmem:[%s896_s19 + $0xa] sm:$0x1] %vm315_vm1, %v413_v41 }
  0xb2   : > { %429 = vst.msk [vmem:[%s896_s19 + $0xe] sm:$0x1] %vm315_vm1, %v414_v42 }
  0xb3   : > { %430 = vst.msk [vmem:[%s896_s19 + $0x12] sm:$0x1] %vm315_vm1, %v415_v43 }
  0xb4   : > { %431 = vst.msk [vmem:[%s896_s19 + $0x16] sm:$0x1] %vm315_vm1, %v416_v44 }
  0xb5   : > { %432 = vst.msk [vmem:[%s896_s19 + $0x1a] sm:$0x1] %vm315_vm1, %v417_v46 }
  0xb6   : > { %433 = vst.msk [vmem:[%s896_s19 + $0x1e] sm:$0x1] %vm315_vm1, %v418_v47 }
  0xb7   : > { %481 = vst.msk [vmem:[%s896_s19 + $0x3] sm:$0x1] %vm315_vm1, %v465_v45 }
  0xb8   : > { %482 = vst.msk [vmem:[%s896_s19 + $0x7] sm:$0x1] %vm315_vm1, %v467_v48 }
  0xb9   : > { %483 = vst.msk [vmem:[%s896_s19 + $0xb] sm:$0x1] %vm315_vm1, %v468_v49 }
  0xba   : > { %484 = vst.msk [vmem:[%s896_s19 + $0xf] sm:$0x1] %vm315_vm1, %v469_v50 }
  0xbb   : > { %485 = vst.msk [vmem:[%s896_s19 + $0x13] sm:$0x1] %vm315_vm1, %v470_v51 }
  0xbc   : > { %486 = vst.msk [vmem:[%s896_s19 + $0x17] sm:$0x1] %vm315_vm1, %v471_v52 }
  0xbd   : > { %487 = vst.msk [vmem:[%s896_s19 + $0x1b] sm:$0x1] %vm315_vm1, %v472_v53 }
  0xbe   : > { %488 = vst.msk [vmem:[%s896_s19 + $0x1f] sm:$0x1] %vm315_vm1, %v473_v54 }
  0xbf   : > { %743 = shalt.err (!%p740_p5)
}
  0xc0   : > { %s797_s10 = smov 64   ;;  %s798_s11 = smov 4  }
  0xc1   : > { %657 = dma.vmem_to_hbm [thread:$0]  (%p859_p4), %s506_s15, 512, %s508_s28, %s490_s29, %s797_s10, %s797_s10, %s798_s11  }
  0xc2 PF: > { %p663_p6 = scmp.ge.s32.totalorder %s794_s17, 2  ;;  %s522_s18 = sand.u32 1, %s774_s12  }
  0xc3   : > { %s523_s19 = scalar_lea.sflag [#allocation3], %s522_s18 }
  0xc4   : > { %p660_p7 = pnand %p663_p6, %p866_p8 }
  0xc6   : > { %p661_p9 = pneg %p660_p7 }
  0xc8   : > { %769 = dma.done.wait (%p661_p9), %s523_s19, 512  }
  0xc9   : > { %771 = vsyncadd (%p661_p9), %s523_s19, 4294966784  ;;  %s16_s17 = sadd.s32 1, %s794_s17   ;;  %s1007_s12 = smov %s778_s13 }
  0xca   : > { %p13_p10 = scmp.ge.s32.totalorder %s16_s17, 4   ;;  %s1008_s13 = smov %s782_s14 }
  0xcb   : > { %s1009_s14 = smov %s872_s25  ;;  %s1010_s15 = smov %s790_s16 }
  0xcc   : > { %s1011_s16 = smov %s1013_s20  ;;  %15 = sbr.rel (!%p13_p10) target bundleno = 4 (0x4), region = 79 }
  0xd1   :  { %529 = vsyncpa [#allocation3], 1 }
  0xd2   :  { %531 = vsyncpa [#allocation3 + $0x1], 1 }

// kernel: sparse_attention.1
= control target key start
LH: loop header
LB: loop body
LE: loop exit
PB: predicated region body
PF: predicated region fallthrough
CT: control target
= control target key end

     0   :  { %s632_s12 = smov 0   ;;  %s634_s13 = smov 0   ;;  %s688_s0 = inlined_call_operand.vmem [shape: f32[2,4,8,8], index: 0, kind: input, shape index: {}]   ;;  %s689_s1 = inlined_call_operand.vmem [shape: f32[2,4,8,8], index: 1, kind: input, shape index: {}]   ;;  %s690_s2 = inlined_call_operand.vmem [shape: f32[2,8,1], index: 2, kind: input, shape index: {}]   ;;  %s691_s3 = inlined_call_operand.vmem [shape: f32[2,4,8,8], index: 3, kind: output, shape index: {}]  }
   0x1   :  { %s636_s14 = smov 0  }
   0x2 LB: > { %s32_s15 = sadd.s32 1, %s605_s13  ;;  %p540_p0 = scmp.ge.s32.totalorder %s609_s14, 1  ;;  %s609_s14 = sphi %s636_s14, %s13_s14   ;;  %s605_s13 = sphi %s634_s13, %s693_s13   ;;  %s601_s12 = sphi %s632_s12, %s692_s12  }
   0x3   : > { %p34_p1 = scmp.ge.s32.totalorder %s32_s15, 2  ;;  %p194_p2 = scmp.lt.s32.totalorder %s609_s14, 3 }
   0x5   : > { %s695_s15 = smov (%p34_p1, %s32_s15), 0  ;;  %p195_p3 = pnand %p540_p0, %p194_p2 }
   0x6   : > { %p242_p4 = scmp.lt.s32.totalorder (!%p195_p3), %s601_s12, 1 }
   0x7   : > { %198 = sbr.rel (%p195_p3) target bundleno = 157 (0x9d), region = 32 }
   0xc   : > { %v611_v0 = vmov 0   ;;  %s697_s12 = smov (!%p242_p4, %s601_s12), 1  ;;  %vm294_vm0 = vcmask 64512  }
   0xd   : > { %586 = vset.pattern.permute.xlu0 %v611_v0  ;;  %s650_s16 = sshll.u32 %s697_s12, 5  ;;  %s545_s17 = sshll.u32 %s697_s12, 3 }
   0xe   : > { %s257_s20 = scalar_lea.vmem %s689_s1, %s650_s16  ;;  %s249_s23 = scalar_lea.vmem %s688_s0, %s650_s16 }
   0xf   : > { %v286_v1 = vld [vmem:[%s257_s20 + $0x10] sm:$0xff]  ;;  %v287_v2 = vld [vmem:[%s257_s20 + $0x18] sm:$0xff]  ;;  %v284_v3 = vld [vmem:[%s257_s20] sm:$0xff]  ;;  %s264_s26 = scalar_lea.vmem %s690_s2, %s545_s17  ;;  %s275_s29 = scalar_lea.vmem %s691_s3, %s650_s16 }
  0x10   : > { %552 = vmatpush.xpose.msk.msra.mxu2 %vm294_vm0, %v286_v1  ;;  %554 = vmatpush.xpose.msk.msra.mxu3 %vm294_vm0, %v287_v2  ;;  %v278_v4 = vld [vmem:[%s249_s23 + $0x10] sm:$0xff]  ;;  %v279_v5 = vld [vmem:[%s249_s23 + $0x18] sm:$0xff]  ;;  %v285_v6 = vld [vmem:[%s257_s20 + $0x8] sm:$0xff] }
  0x11   : > { %v282_v7 = vmul.f32 0.35355338, %v278_v4  ;;  %v283_v8 = vmul.f32 0.35355338, %v279_v5  ;;  %548 = vmatpush.xpose.msk.msra.mxu0 %vm294_vm0, %v284_v3  ;;  %550 = vmatpush.xpose.msk.msra.mxu1 %vm294_vm0, %v285_v6  ;;  %v276_v9 = vld [vmem:[%s249_s23] sm:$0xff]  ;;  %v277_v10 = vld [vmem:[%s249_s23 + $0x8] sm:$0xff] }
  0x12   : > { %v280_v11 = vmul.f32 0.35355338, %v276_v9  ;;  %v281_v12 = vmul.f32 0.35355338, %v277_v10  ;;  %v288_v13 = vld [vmem:[%s264_s26] sm:$0xff] }
  0x13   : > { %553 = vmatmul.msk.f32.vlgmr.msra.gmra.mxu2 %vm294_vm0, %v282_v7  ;;  %555 = vmatmul.msk.f32.vlgmr.msra.gmra.mxu3 %vm294_vm0, %v283_v8 }
  0x14   : > { %549 = vmatmul.msk.f32.vlgmr.msra.gmra.mxu0 %vm294_vm0, %v280_v11  ;;  %551 = vmatmul.msk.f32.vlgmr.msra.gmra.mxu1 %vm294_vm0, %v281_v12 }
  0x15   : > { %291 = vperm.xlu0 %586, %v288_v13  }
  0x87   : > { %v292_v14 = vpop.permute.xlu0 %291 }
  0x91   : > { %v318_v15 = vpop.f32.mrf.mxu0  ;;  %v344_v16 = vpop.f32.mrf.mxu1 }
  0x92   : > { %v319_v17 = vadd.f32 %v318_v15, %v292_v14  ;;  %v345_v18 = vadd.f32 %v344_v16, %v292_v14 }
  0x94   : > { %v399_v19 = vmax.f32 %v319_v17, 0.0  ;;  %v400_v20 = vmax.f32 %v345_v18, 0.0 }
  0x96   : > { %403 = vst.msk [vmem:[%s275_s29] sm:$0xff] %vm294_vm0, %v399_v19  ;;  %v370_v21 = vpop.f32.mrf.mxu2  ;;  %v396_v22 = vpop.f32.mrf.mxu3 }
  0x97   : > { %404 = vst.msk [vmem:[%s275_s29 + $0x8] sm:$0xff] %vm294_vm0, %v400_v20  ;;  %v371_v23 = vadd.f32 %v370_v21, %v292_v14  ;;  %v397_v24 = vadd.f32 %v396_v22, %v292_v14 }
  0x99   : > { %v401_v25 = vmax.f32 %v371_v23, 0.0  ;;  %v402_v26 = vmax.f32 %v397_v24, 0.0 }
  0x9b   : > { %405 = vst.msk [vmem:[%s275_s29 + $0x10] sm:$0xff] %vm294_vm0, %v401_v25 }
  0x9c   : > { %406 = vst.msk [vmem:[%s275_s29 + $0x18] sm:$0xff] %vm294_vm0, %v402_v26 }
  0x9d PF: > { %s13_s14 = sadd.s32 1, %s609_s14   ;;  %s692_s12 = smov %s605_s13 }
  0x9e   : > { %p10_p5 = scmp.ge.s32.totalorder %s13_s14, 4   ;;  %s693_s13 = smov %s695_s15 }
  0xa0   :  { %12 = sbr.rel (!%p10_p5) target bundleno = 2 (0x2), region = 68 }

</bundles_post_ra>
